<compile_context>
chip_gen: v7x
topology: tpu7x:2x2x1
jax: 0.10.0
libtpu: 0.0.40
codegen_flags: <defaults>
</compile_context>

<pallas_src>
import functools

import jax
import jax.numpy as jnp
from jax.experimental import pallas as pl
from jax.experimental.pallas import tpu as pltpu


def _round_up(x, m):
    return (x + m - 1) // m * m


def _soft_dice_partials_kernel(x_ref, t_ref, out_ref, acc_inter, acc_union, *,
                               n_classes, chunk, n_chunks, has_padding):
    s_idx = pl.program_id(2)

    @pl.when(s_idx == 0)
    def _():
        acc_inter[...] = jnp.zeros_like(acc_inter)
        acc_union[...] = jnp.zeros_like(acc_union)

    # Class-index iota hoisted out of the chunk loop (JAX does not CSE
    # broadcasts inside loops).
    cls = jax.lax.broadcasted_iota(jnp.int32, (n_classes, chunk), 0)

    def body(c, carry):
        inter_c, union_c = carry
        off = pl.multiple_of(c * chunk, chunk)
        x = x_ref[0, :, pl.ds(off, chunk)].astype(jnp.float32)   # (C, chunk)
        t = t_ref[0, :, pl.ds(off, chunk)].astype(jnp.int32)     # (1, chunk)

        # softmax over the class (sublane) axis: cheap C-wide reduce per lane.
        m = jnp.max(x, axis=0, keepdims=True)
        e = jnp.exp(x - m)
        inv = pl.reciprocal(jnp.sum(e, axis=0, keepdims=True), approx=True)  # EUP
        p = e * inv                                              # (C, chunk)

        mask = cls == t                 # boolean one-hot; never materialized as f32
        pp = p * p
        if has_padding:
            # Padded voxels carry the sentinel class == n_classes, so `mask`
            # is already all-False there; only the softmax p*p term needs
            # explicit zeroing.  Only traced when padding actually exists.
            pp = jnp.where(t < n_classes, pp, 0.0)
        inter_c = inter_c + jnp.where(mask, p, 0.0)
        union_c = union_c + jnp.where(mask, pp + 1.0, pp)        # onehot**2 == onehot
        return inter_c, union_c

    zero = jnp.zeros((n_classes, chunk), jnp.float32)
    inter_c, union_c = jax.lax.fori_loop(0, n_chunks, body, (zero, zero))

    # One narrow VMEM read-modify-write per grid step (not per column vreg).
    acc_inter[...] += inter_c
    acc_union[...] += union_c

    @pl.when(s_idx == pl.num_programs(2) - 1)
    def _():
        # Single cross-lane reduce per (batch, half), amortized over the grid.
        out_ref[0, 0, :] = jnp.sum(acc_inter[...], axis=-1)
        out_ref[0, 1, :] = jnp.sum(acc_union[...], axis=-1)


def _choose_tiling(S, C, x_itemsize, *, vmem_budget_bytes, tn_cap):
    """Pick (chunk, tn, n_halves, tiles_per_half, S_pad, vmem_estimate)."""
    # Lane width processed per inner-loop iteration (register-resident partials).
    chunk = 512 if S >= 512 else _round_up(max(S, 1), 128)

    # VMEM bytes per voxel column, using *sublane-padded* shapes:
    #   x block (1, C, tn): C pads to the dtype sublane tile (8 f32 / 16 bf16 / 32 i8),
    #   target block (1, 1, tn): sublane dim 1 pads to a 32-byte column regardless
    #   of dtype.  Both are double-buffered by the pipeline.
    sub_tile = 8 * max(1, 4 // x_itemsize)
    x_col = _round_up(C, sub_tile) * x_itemsize
    per_col = 2 * x_col + 2 * 32

    cap = max(chunk, (min(tn_cap, vmem_budget_bytes // per_col) // chunk) * chunk)
    tn = min(cap, _round_up(S, chunk))

    tiles_total = -(-S // tn)
    n_halves = 2 if tiles_total >= 2 else 1     # keep both v7x TCs busy even for N == 1
    tiles_per_half = -(-tiles_total // n_halves)
    S_pad = n_halves * tiles_per_half * tn

    acc_bytes = 2 * _round_up(C, 8) * 4 * chunk          # (C, chunk) f32 accumulators
    vmem_estimate = per_col * tn + acc_bytes
    return chunk, tn, n_halves, tiles_per_half, S_pad, vmem_estimate


def soft_dice_loss(x, target, n_classes, *, tn_cap=65536, vmem_budget_bytes=8 << 20):
    """x: (N, C, D, H, W) float (any dtype); target: (N, D, H, W) int."""
    N, C, D, H, W = x.shape
    assert C == n_classes
    S = D * H * W
    smooth = 1e-5

    # Pure reshapes only -- no HBM transpose.  Callers may pass bf16 logits to
    # halve x HBM traffic; the kernel upcasts to f32 per chunk.
    x_r = x.reshape(N, C, S)
    # int8 targets cut target HBM traffic 4x; int32 fallback keeps >127 classes legal.
    t_dtype = jnp.int8 if n_classes <= 127 else jnp.int32
    t_r = target.reshape(N, 1, S).astype(t_dtype)

    chunk, tn, n_halves, tiles_per_half, S_pad, vmem_est = _choose_tiling(
        S, C, x_r.dtype.itemsize, vmem_budget_bytes=vmem_budget_bytes, tn_cap=tn_cap)

    has_padding = S_pad != S
    if has_padding:
        # TODO(synk): replace the wrapper-side pad of x with an in-kernel lane
        # mask over the last tile to avoid this extra HBM copy for awkward S.
        x_r = jnp.pad(x_r, ((0, 0), (0, 0), (0, S_pad - S)))
        t_r = jnp.pad(t_r, ((0, 0), (0, 0), (0, S_pad - S)),
                      constant_values=n_classes)   # sentinel class -> no one-hot hit

    kernel = functools.partial(
        _soft_dice_partials_kernel,
        n_classes=n_classes, chunk=chunk, n_chunks=tn // chunk,
        has_padding=has_padding)

    partials = pl.pallas_call(
        kernel,
        out_shape=jax.ShapeDtypeStruct((N * n_halves, 2, C), jnp.float32),
        grid_spec=pltpu.PrefetchScalarGridSpec(
            num_scalar_prefetch=0,
            grid=(N, n_halves, tiles_per_half),
            in_specs=[
                pl.BlockSpec((1, C, tn),
                             lambda n, h, s: (n, 0, h * tiles_per_half + s)),
                pl.BlockSpec((1, 1, tn),
                             lambda n, h, s: (n, 0, h * tiles_per_half + s)),
            ],
            out_specs=pl.BlockSpec((1, 2, C),
                                   lambda n, h, s: (n * n_halves + h, 0, 0)),
            scratch_shapes=[
                pltpu.VMEM((C, chunk), jnp.float32),
                pltpu.VMEM((C, chunk), jnp.float32),
            ],
        ),
        compiler_params=pltpu.CompilerParams(
            dimension_semantics=("parallel", "parallel", "arbitrary"),
            vmem_limit_bytes=int(min(vmem_est * 1.25 + (4 << 20), 64 << 20)),
        ),
    )(x_r, t_r)

    # Tiny epilogue in plain JAX: combine per-(batch, half) partials.
    partials = partials.reshape(N, n_halves, 2, C)
    inter = jnp.sum(partials[:, :, 0, :], axis=(0, 1)) + smooth
    union = jnp.sum(partials[:, :, 1, :], axis=(0, 1)) + smooth
    score = jnp.sum(2.0 * inter / union)
    return 1.0 - score / (float(N) * float(n_classes))


def _reference_soft_dice_loss(x, target, n_classes):
    smooth = 1e-5
    N = x.shape[0]
    p = jax.nn.softmax(x.astype(jnp.float32), axis=1)
    oh = jax.nn.one_hot(target, n_classes, dtype=jnp.float32)        # (N,D,H,W,C)
    oh = jnp.transpose(oh, (0, 4, 1, 2, 3))                          # (N,C,D,H,W)
    inter = jnp.sum(p * oh, axis=(0, 2, 3, 4)) + smooth
    union = (jnp.sum(p * p, axis=(0, 2, 3, 4))
             + jnp.sum(oh * oh, axis=(0, 2, 3, 4)) + smooth)
    score = jnp.sum(2.0 * inter / union)
    return 1.0 - score / (float(N) * float(n_classes))


if __name__ == "__main__":
    key = jax.random.PRNGKey(0)
    k1, k2, k3, k4 = jax.random.split(key, 4)

    # Case 1: small canonical shape (single spatial tile, no padding).
    n_classes = 4
    N, D, H, W = 2, 4, 8, 8                      # S = 256
    x = jax.random.normal(k1, (N, n_classes, D, H, W), dtype=jnp.float32)
    t = jax.random.randint(k2, (N, D, H, W), 0, n_classes, dtype=jnp.int32)
    loss = jax.block_until_ready(soft_dice_loss(x, t, n_classes))
    ref = _reference_soft_dice_loss(x, t, n_classes)
    # approx=True reciprocal in the softmax denominator -> ~1e-3 relative error
    assert jnp.allclose(loss, ref, atol=3e-3, rtol=3e-3), (loss, ref)

    # Case 2: N=1, C=5, awkward S -> multi-tile grid, two parallel spatial
    # halves, the chunked inner loop and the sentinel-padded last tiles are
    # all exercised (tn_cap forces small tiles at this toy size).
    n_classes2 = 5
    N2, D2, H2, W2 = 1, 8, 16, 36                # S = 4608
    x2 = jax.random.normal(k3, (N2, n_classes2, D2, H2, W2), dtype=jnp.float32)
    t2 = jax.random.randint(k4, (N2, D2, H2, W2), 0, n_classes2, dtype=jnp.int32)
    loss2 = jax.block_until_ready(soft_dice_loss(x2, t2, n_classes2, tn_cap=1024))
    ref2 = _reference_soft_dice_loss(x2, t2, n_classes2)
    assert jnp.allclose(loss2, ref2, atol=3e-3, rtol=3e-3), (loss2, ref2)

    print("KERNEL_OK")
</pallas_src>

<mosaic_0001>
module attributes {stable_mosaic.version = 11 : i64} {
  func.func @_soft_dice_partials_kernel(%arg0: i32, %arg1: i32, %arg2: i32, %arg3: memref<1x4x256xf32, #tpu.memory_space<vmem>>, %arg4: memref<1x1x256xi8, #tpu.memory_space<vmem>>, %arg5: memref<1x2x4xf32, #tpu.memory_space<vmem>>, %arg6: memref<4x256xf32, #tpu.memory_space<vmem>>, %arg7: memref<4x256xf32, #tpu.memory_space<vmem>>) attributes {dimension_semantics = [#tpu.dimension_semantics<parallel>, #tpu.dimension_semantics<parallel>, #tpu.dimension_semantics<arbitrary>], iteration_bounds = array<i64: 2, 1, 1>, scalar_prefetch = 0 : i64, scratch_operands = 2 : i64, tpu.core_type = #tpu.core_type<tc>, window_params = [{transform_indices = @transform_0, window_bounds = array<i64: 1, 4, 256>}, {transform_indices = @transform_1, window_bounds = array<i64: 1, 1, 256>}, {transform_indices = @transform_2, window_bounds = array<i64: 1, 2, 4>}]} {
    %c0_i32 = arith.constant 0 : i32
    %0 = arith.cmpi eq, %arg2, %c0_i32 : i32
    %1 = arith.extui %0 : i1 to i32
    %c0_i32_0 = arith.constant 0 : i32
    %2 = arith.cmpi ne, %1, %c0_i32_0 : i32
    scf.if %2 {
      %cst_19 = arith.constant 0.000000e+00 : f32
      %43 = vector.broadcast %cst_19 : f32 to vector<4x256xf32>
      %c0_20 = arith.constant 0 : index
      %c0_21 = arith.constant 0 : index
      %44 = vector.load %arg6[%c0_20, %c0_21] : memref<4x256xf32, #tpu.memory_space<vmem>>, vector<4x256xf32>
      tpu.vector_store %arg6[%c0_20, %c0_21], %43 {strides = array<i32>} : memref<4x256xf32, #tpu.memory_space<vmem>>, vector<4x256xf32>,
      %cst_22 = arith.constant 0.000000e+00 : f32
      %45 = vector.broadcast %cst_22 : f32 to vector<4x256xf32>
      %c0_23 = arith.constant 0 : index
      %c0_24 = arith.constant 0 : index
      %46 = vector.load %arg7[%c0_23, %c0_24] : memref<4x256xf32, #tpu.memory_space<vmem>>, vector<4x256xf32>
      tpu.vector_store %arg7[%c0_23, %c0_24], %45 {strides = array<i32>} : memref<4x256xf32, #tpu.memory_space<vmem>>, vector<4x256xf32>,
    } else {
    }
    %3 = tpu.iota {dimensions = array<i32: 0>} : vector<4x256xi32>
    %cst = arith.constant 0.000000e+00 : f32
    %4 = vector.broadcast %cst : f32 to vector<4x256xf32>
    %c0_i32_1 = arith.constant 0 : i32
    %c256_i32 = arith.constant 256 : i32
    %5 = arith.muli %c0_i32_1, %c256_i32 : i32
    %6 = tpu.assume_multiple %5, 256 : i32
    %c0 = arith.constant 0 : index
    %c0_2 = arith.constant 0 : index
    %7 = arith.index_cast %6 : i32 to index
    %8 = vector.load %arg3[%c0, %c0_2, %7] : memref<1x4x256xf32, #tpu.memory_space<vmem>>, vector<1x4x256xf32>
    %9 = vector.shape_cast %8 : vector<1x4x256xf32> to vector<4x256xf32>
    %c0_3 = arith.constant 0 : index
    %c0_4 = arith.constant 0 : index
    %10 = arith.index_cast %6 : i32 to index
    %11 = vector.load %arg4[%c0_3, %c0_4, %10] : memref<1x1x256xi8, #tpu.memory_space<vmem>>, vector<1x1x256xi8>
    %12 = vector.shape_cast %11 : vector<1x1x256xi8> to vector<1x256xi8>
    %13 = arith.extsi %12 : vector<1x256xi8> to vector<1x256xi32>
    %cst_5 = arith.constant dense<0xFF800000> : vector<256xf32>
    %14 = vector.multi_reduction <maximumf>, %9, %cst_5 [0] : vector<4x256xf32> to vector<256xf32>
    %15 = vector.shape_cast %14 : vector<256xf32> to vector<1x256xf32>
    %16 = vector.broadcast %15 : vector<1x256xf32> to vector<4x256xf32>
    %17 = arith.subf %9, %16 : vector<4x256xf32>
    %18 = math.exp %17 : vector<4x256xf32>
    %cst_6 = arith.constant dense<0.000000e+00> : vector<256xf32>
    %19 = vector.multi_reduction <add>, %18, %cst_6 [0] : vector<4x256xf32> to vector<256xf32>
    %20 = vector.shape_cast %19 : vector<256xf32> to vector<1x256xf32>
    %21 = tpu.reciprocal %20 {approx = true} : vector<1x256xf32> -> vector<1x256xf32>
    %22 = vector.broadcast %21 : vector<1x256xf32> to vector<4x256xf32>
    %23 = arith.mulf %18, %22 : vector<4x256xf32>
    %24 = vector.broadcast %13 : vector<1x256xi32> to vector<4x256xi32>
    %25 = arith.cmpi eq, %3, %24 : vector<4x256xi32>
    %26 = arith.mulf %23, %23 : vector<4x256xf32>
    %cst_7 = arith.constant 0.000000e+00 : f32
    %27 = vector.broadcast %cst_7 : f32 to vector<4x256xf32>
    %28 = arith.select %25, %23, %27 : vector<4x256xi1>, vector<4x256xf32>
    %29 = arith.addf %4, %28 : vector<4x256xf32>
    %cst_8 = arith.constant 1.000000e+00 : f32
    %30 = vector.broadcast %cst_8 : f32 to vector<4x256xf32>
    %31 = arith.addf %26, %30 : vector<4x256xf32>
    %32 = arith.select %25, %31, %26 : vector<4x256xi1>, vector<4x256xf32>
    %33 = arith.addf %4, %32 : vector<4x256xf32>
    %c1_i32 = arith.constant 1 : i32
    %c0_9 = arith.constant 0 : index
    %c0_10 = arith.constant 0 : index
    %34 = vector.load %arg6[%c0_9, %c0_10] : memref<4x256xf32, #tpu.memory_space<vmem>>, vector<4x256xf32>
    %35 = arith.addf %34, %29 : vector<4x256xf32>
    %c0_11 = arith.constant 0 : index
    %c0_12 = arith.constant 0 : index
    %36 = vector.load %arg6[%c0_11, %c0_12] : memref<4x256xf32, #tpu.memory_space<vmem>>, vector<4x256xf32>
    tpu.vector_store %arg6[%c0_11, %c0_12], %35 {strides = array<i32>} : memref<4x256xf32, #tpu.memory_space<vmem>>, vector<4x256xf32>,
    %c0_13 = arith.constant 0 : index
    %c0_14 = arith.constant 0 : index
    %37 = vector.load %arg7[%c0_13, %c0_14] : memref<4x256xf32, #tpu.memory_space<vmem>>, vector<4x256xf32>
    %38 = arith.addf %37, %33 : vector<4x256xf32>
    %c0_15 = arith.constant 0 : index
    %c0_16 = arith.constant 0 : index
    %39 = vector.load %arg7[%c0_15, %c0_16] : memref<4x256xf32, #tpu.memory_space<vmem>>, vector<4x256xf32>
    tpu.vector_store %arg7[%c0_15, %c0_16], %38 {strides = array<i32>} : memref<4x256xf32, #tpu.memory_space<vmem>>, vector<4x256xf32>,
    %c0_i32_17 = arith.constant 0 : i32
    %40 = arith.cmpi eq, %arg2, %c0_i32_17 : i32
    %41 = arith.extui %40 : i1 to i32
    %c0_i32_18 = arith.constant 0 : i32
    %42 = arith.cmpi ne, %41, %c0_i32_18 : i32
    scf.if %42 {
      %c0_19 = arith.constant 0 : index
      %c0_20 = arith.constant 0 : index
      %43 = vector.load %arg6[%c0_19, %c0_20] : memref<4x256xf32, #tpu.memory_space<vmem>>, vector<4x256xf32>
      %cst_21 = arith.constant dense<0.000000e+00> : vector<4xf32>
      %44 = vector.multi_reduction <add>, %43, %cst_21 [1] : vector<4x256xf32> to vector<4xf32>
      %c0_22 = arith.constant 0 : index
      %c0_23 = arith.constant 0 : index
      %c0_24 = arith.constant 0 : index
      %45 = vector.load %arg5[%c0_22, %c0_23, %c0_24] : memref<1x2x4xf32, #tpu.memory_space<vmem>>, vector<1x1x4xf32>
      %46 = vector.shape_cast %45 : vector<1x1x4xf32> to vector<4xf32>
      %47 = vector.shape_cast %44 : vector<4xf32> to vector<1x1x4xf32>
      tpu.vector_store %arg5[%c0_22, %c0_23, %c0_24], %47 {strides = array<i32>} : memref<1x2x4xf32, #tpu.memory_space<vmem>>, vector<1x1x4xf32>,
      %c0_25 = arith.constant 0 : index
      %c0_26 = arith.constant 0 : index
      %48 = vector.load %arg7[%c0_25, %c0_26] : memref<4x256xf32, #tpu.memory_space<vmem>>, vector<4x256xf32>
      %cst_27 = arith.constant dense<0.000000e+00> : vector<4xf32>
      %49 = vector.multi_reduction <add>, %48, %cst_27 [1] : vector<4x256xf32> to vector<4xf32>
      %c0_28 = arith.constant 0 : index
      %c1 = arith.constant 1 : index
      %c0_29 = arith.constant 0 : index
      %50 = vector.load %arg5[%c0_28, %c1, %c0_29] : memref<1x2x4xf32, #tpu.memory_space<vmem>>, vector<1x1x4xf32>
      %51 = vector.shape_cast %50 : vector<1x1x4xf32> to vector<4xf32>
      %52 = vector.shape_cast %49 : vector<4xf32> to vector<1x1x4xf32>
      tpu.vector_store %arg5[%c0_28, %c1, %c0_29], %52 {strides = array<i32>} : memref<1x2x4xf32, #tpu.memory_space<vmem>>, vector<1x1x4xf32>,
    } else {
    }
    return
  }
  func.func @transform_0(%arg0: i32, %arg1: i32, %arg2: i32) -> (i32, i32, i32) {
    %c1_i32 = arith.constant 1 : i32
    %0 = arith.muli %arg1, %c1_i32 : i32
    %1 = arith.addi %0, %arg2 : i32
    %c0_i32 = arith.constant 0 : i32
    %c0_i32_0 = arith.constant 0 : i32
    return %arg0, %c0_i32, %1 : i32, i32, i32
  }
  func.func @transform_1(%arg0: i32, %arg1: i32, %arg2: i32) -> (i32, i32, i32) {
    %c1_i32 = arith.constant 1 : i32
    %0 = arith.muli %arg1, %c1_i32 : i32
    %1 = arith.addi %0, %arg2 : i32
    %c0_i32 = arith.constant 0 : i32
    %c0_i32_0 = arith.constant 0 : i32
    return %arg0, %c0_i32, %1 : i32, i32, i32
  }
  func.func @transform_2(%arg0: i32, %arg1: i32, %arg2: i32) -> (i32, i32, i32) {
    %c1_i32 = arith.constant 1 : i32
    %0 = arith.muli %arg0, %c1_i32 : i32
    %1 = arith.addi %0, %arg1 : i32
    %c0_i32 = arith.constant 0 : i32
    %c0_i32_0 = arith.constant 0 : i32
    %c0_i32_1 = arith.constant 0 : i32
    return %1, %c0_i32, %c0_i32_0 : i32, i32, i32
  }
}

</mosaic_0001>

<bundles_post_ra>
// kernel: tpu_custom_call.1
= control target key start
LH: loop header
LB: loop body
LE: loop exit
PB: predicated region body
PF: predicated region fallthrough
CT: control target
= control target key end

     0   :  { %7 = vsyncpa [#allocation5], 0  ;;  %s912_s0 = inlined_call_operand.hbm [shape: f32[2,4,256], index: 0, kind: input, shape index: {}]   ;;  %s913_s1 = inlined_call_operand.vmem [shape: s8[2,1,256], index: 1, kind: input, shape index: {}]   ;;  %s914_s2 = inlined_call_operand.hbm [shape: f32[2,2,4], index: 2, kind: output, shape index: {}]  }
   0x1   :  { %9 = vsyncpa [#allocation5 + $0x1], 0 }
   0x2   :  { %10 = vsyncpa [#allocation6], 0 }
   0x3   :  { %12 = vsyncpa [#allocation6 + $0x1], 0  ;;  %s714_s9 = smov 0   ;;  %s716_s10 = smov 0  }
   0x4   :  { %s718_s11 = smov 0   ;;  %s720_s12 = smov 0  }
   0x5   :  { %s722_s13 = smov 0   ;;  %s724_s14 = smov 0  }
   0x6 LB: > { %s496_s15 = sadd.s32 4294967295, %s695_s14   ;;  %s497_s16 = sadd.s32 4294967294, %s695_s14   ;;  %s695_s14 = sphi %s724_s14, %s18_s14   ;;  %s691_s13 = sphi %s722_s13, %s932_s13   ;;  %s687_s12 = sphi %s720_s12, %s931_s12   ;;  %s683_s11 = sphi %s718_s11, %s930_s11   ;;  %s679_s10 = sphi %s716_s10, %s929_s10   ;;  %s675_s9 = sphi %s714_s9, %s928_s9  }
   0x7   : > { %s37_s17 = sadd.s32 1, %s691_s13  ;;  %s48_s18 = sadd.s32 1, %s683_s11 }
   0x8   : > { %p39_p0 = scmp.ge.s32.totalorder %s37_s17, 2  ;;  %p55_p1 = scmp.ne.s32.totalorder %s683_s11, %s679_s10 }
   0x9   : > { %p56_p2 = scmp.eq.s32.totalorder %s695_s14, 0  ;;  %p61_p3 = scmp.ne.s32.totalorder %s679_s10, %s675_s9 }
   0xa   : > { %s934_s17 = smov (%p39_p0, %s37_s17), 0  ;;  %p62_p5 = scmp.eq.s32.totalorder %s496_s15, 0 }
   0xb   : > { %p755_p4 = por %p56_p2, %p55_p1  ;;  %s43_s20 = ssub.s32 %s691_s13, %s934_s17 }
   0xc   : > { %p117_p6 = scmp.eq.s32.totalorder %s496_s15, 1  ;;  %p46_p7 = scmp.eq.s32.totalorder %s43_s20, 0 }
   0xd   : > { %p761_p8 = por %p62_p5, %p61_p3  ;;  %p123_p10 = scmp.eq.s32.totalorder %s497_s16, 1 }
   0xe   : > { %p765_p9 = por %p117_p6, %p55_p1  ;;  %p526_p13 = scmp.lt.s32.totalorder %s695_s14, 2 }
   0xf   : > { %s770_s23 = scalar_select %p46_p7, %s683_s11, %s48_s18  }
  0x10   : > { %s918_s22 = scalar_select %p765_p9, 1, 0 }
  0x11   : > { %p772_p11 = por %p123_p10, %p61_p3  ;;  %s143_s25 = sand.u32 1, %s683_s11  }
  0x12   : > { %s500_s26 = sshll.u32 %s143_s25, 3  ;;  %s511_s27 = sshll.u32 %s691_s13, 7 }
  0x13   : > { %s919_s24 = scalar_select %p772_p11, 1, 0 }
  0x14   : > { %s783_s30 = scalar_lea.hbm %s912_s0, %s511_s27  ;;  %s147_s3 = scalar_lea.vmem [#allocation4], %s500_s26 }
  0x15   : > { %s158_s4 = sshll.u32 %s147_s3, 4  ;;  %p789_p0 = pnand %p526_p13, %p755_p4  ;;  %s785_s4 = int_to_ptr.vmem [resolvable:$true] %s158_s4 }
  0x16   : > { %s144_s6 = scalar_lea.sflag [#allocation5], %s143_s25  ;;  %s583_s7 = scalar_lea.hbm %s783_s30, 128 }
  0x17   : > { %p584_p3 = scmp.ne.s32.totalorder %s783_s30, %s583_s7  ;;  %p585_p5 = pneg %p789_p0 }
  0x18   : > { %s588_s16 = scalar_lea.hbm %s912_s0, 256  ;;  %p589_p4 = scmp.lt.u32.totalorder %s783_s30, %s912_s0 }
  0x19   : > { %p586_p6 = pnand %p585_p5, %p584_p3  ;;  %p590_p10 = scmp.lt.u32.totalorder %s588_s16, %s583_s7 }
  0x1a   : > { %p592_p12 = scmp.lt.u32.totalorder %s583_s7, %s783_s30 }
  0x1b   : > { %p587_p7 = pneg %p586_p6  ;;  %p591_p13 = por %p590_p10, %p589_p4 }
  0x1d   : > { %p593_p1 = por %p592_p12, %p591_p13 }
  0x1f   : > { %p594_p2 = pnand %p593_p1, %p587_p7 }
  0x21   : > { %597 = shalt.err (!%p594_p2)
}
  0x22   : > { %s598_s20 = scalar_lea.vmem %s785_s4, 128  ;;  %s697_s25 = smov [#allocation4]  }
  0x23   : > { %p599_p3 = scmp.ne.s32.totalorder %s785_s4, %s598_s20  ;;  %s603_s26 = sshll.u32 %s697_s25, 4  ;;  %s604_s26 = int_to_ptr.vmem [resolvable:$false] %s603_s26 }
  0x24   : > { %s605_s27 = scalar_lea.vmem %s604_s26, 256  ;;  %p606_p9 = scmp.lt.s32.totalorder %s785_s4, %s604_s26 }
  0x25   : > { %p601_p6 = pnand %p599_p3, %p585_p5  ;;  %p607_p4 = scmp.lt.s32.totalorder %s605_s27, %s598_s20 }
  0x27   : > { %p602_p11 = pneg %p601_p6  ;;  %p608_p10 = por %p607_p4, %p606_p9 }
  0x29   : > { %p609_p12 = pnand %p608_p10, %p602_p11 }
  0x2b   : > { %612 = shalt.err (!%p609_p12)
}
  0x2c   : > { %521 = dma.hbm_to_vmem [thread:$0]  (!%p789_p0), %s783_s30, 128, %s785_s4, %s144_s6  }
  0x2d   : > { %p921_p1 = scmp.lt.s32.totalorder %s695_s14, 3  ;;  %p922_p2 = scmp.ge.s32.totalorder %s695_s14, 1 }
  0x2f   : > { %p178_p5 = pnand %p922_p2, %p921_p1 }
  0x30   : > { %s825_s28 = sand.u32 (!%p178_p5), 1, %s679_s10  }
  0x31   : > { %181 = sbr.rel (%p178_p5) target bundleno = 290 (0x122), region = 28  ;;  %s504_s29 = sshll.u32 (!%p178_p5), %s825_s28, 3 }
  0x32   : > { %s184_s3 = scalar_lea.sflag (!%p178_p5), [#allocation5], %s825_s28  ;;  %s187_s7 = scalar_lea.vmem (!%p178_p5), [#allocation4], %s504_s29 }
  0x38   : > { %666 = dma.done.wait (%p761_p8), %s184_s3, 128  }
  0x39   : > { %668 = vsyncadd (%p761_p8), %s184_s3, 4294967168  ;;  %v237_v0 = vlaneseq  ;;  %vm245_vm0 = vcmask 1043456   ;;  %v239_v4 = vld [vmem:[%s187_s7] sm:$0xff]  ;;  %p221_p8 = scmp.lt.s32.totalorder %s687_s12, 1  ;;  %s505_s8 = sshll.u32 %s825_s28, 1  ;;  %vm362_vm3 = vcmask 24576  }
  0x3a   : > { %v243_v5 = vcombine.high %v239_v4, %v239_v4  ;;  %v246_v6 = vsel %vm245_vm0, %v239_v4, -inf  ;;  %s508_s15 = sshll.u32 %s687_s12, 5  ;;  %s216_s16 = scalar_lea.vmem [#allocation7], %s505_s8 }
  0x3b   : > { %v238_v1 = vshrl.u32 %v237_v0, 7  ;;  %v356_v2 = vand.u32 127, %v237_v0  ;;  %v247_v7 = vrot.slane %v246_v6, 4  ;;  %s222_s21 = scalar_select %p221_p8, %s687_s12, 1 }
  0x3c   : > { %v253_v8 = vsel %vm245_vm0, %v243_v5, -inf  ;;  %s395_s18 = sshll.u32 %s216_s16, 4  ;;  %s863_s25 = scalar_lea.hbm %s914_s2, %s508_s15  ;;  %s865_s18 = int_to_ptr.vmem [resolvable:$true] %s395_s18 }
  0x3d   : > { %v833_v3 = vsub.s32 %v356_v2, %v238_v1  ;;  %v248_v9 = vmax.f32 %v246_v6, %v247_v7  ;;  %v254_v10 = vrot.slane %v253_v8, 4  ;;  %s506_s30 = sshll.u32 %s222_s21, 1  ;;  %v293_v41 = vsub.s32 0, %v238_v1  ;;  %s381_s26 = scalar_lea.sflag [#allocation6], %s825_s28 }
  0x3e   : > { %s227_s6 = scalar_lea.vmem %s913_s1, %s506_s30  ;;  %v297_v42 = vsub.s32 4, %v238_v1  ;;  %s613_s27 = scalar_lea.vmem %s865_s18, 32 }
  0x3f   : > { %v249_v11 = vrot.slane %v248_v9, 2  ;;  %v255_v12 = vmax.f32 %v253_v8, %v254_v10  ;;  %v240_v38 = vld [vmem:[%s227_s6] sm:$0x3]  ;;  %p614_p9 = scmp.ne.s32.totalorder %s865_s18, %s613_s27  ;;  %p925_p11 = scmp.ne.s32.totalorder %s918_s22, 0 }
  0x40   : > { %v241_v40 = vunpack.c.0.s8 %v240_v38  ;;  %s698_s12 = smov [#allocation7]  }
  0x41   : > { %v250_v13 = vmax.f32 %v248_v9, %v249_v11  ;;  %v256_v14 = vrot.slane %v255_v12, 2  ;;  %p615_p0 = pnand %p614_p9, %p925_p11  ;;  %s617_s29 = sshll.u32 %s698_s12, 4  ;;  %s618_s29 = int_to_ptr.vmem [resolvable:$false] %s617_s29 }
  0x42   : > { %v294_v43 = vrot.slane %v241_v40, %v293_v41  ;;  %v298_v44 = vrot.slane %v241_v40, %v297_v42  ;;  %s619_s3 = scalar_lea.vmem %s618_s29, 64  ;;  %p620_p13 = scmp.lt.s32.totalorder %s865_s18, %s618_s29 }
  0x43   : > { %v251_v15 = vrot.slane %v250_v13, 1  ;;  %v257_v16 = vmax.f32 %v255_v12, %v256_v14  ;;  %p616_p7 = pneg %p615_p0  ;;  %p621_p3 = scmp.lt.s32.totalorder %s619_s3, %s613_s27 }
  0x44   : > { %v302_v46 = vrot.slane %v294_v43, %v293_v41  ;;  %v306_v48 = vrot.slane %v298_v44, %v293_v41 }
  0x45   : > { %v252_v17 = vmax.f32 %v250_v13, %v251_v15  ;;  %v258_v18 = vrot.slane %v257_v16, 1  ;;  %p622_p6 = por %p621_p3, %p620_p13 }
  0x46   : > { %vm844_vm1 = vcmp.eq.s32.totalorder %v238_v1, %v302_v46  ;;  %vm308_vm2 = vcmp.eq.s32.totalorder %v238_v1, %v306_v48 }
  0x47   : > { %v259_v19 = vmax.f32 %v257_v16, %v258_v18  ;;  %p623_p4 = pnand %p622_p6, %p616_p7 }
  0x49   : > { %v262_v20 = vcombine.low %v252_v17, %v259_v19 }
  0x4b   : > { %v264_v21 = vsub.f32 %v239_v4, %v262_v20 }
  0x4d   : > { %v265_v22 = vmul.f32 1.442695, %v264_v21 }
  0x4f   : > { %577 = vpow2.f32 %v265_v22 }
  0x59   : > { %v578_v23 = vpop.eup %577 }
  0x5a   : > { %v268_v24 = vcombine.high %v578_v23, %v578_v23  ;;  %v270_v25 = vsel %vm245_vm0, %v578_v23, 0.0 }
  0x5b   : > { %v271_v26 = vrot.slane %v270_v25, 4 }
  0x5c   : > { %v277_v27 = vsel %vm245_vm0, %v268_v24, 0.0 }
  0x5d   : > { %v272_v28 = vadd.f32 %v271_v26, %v270_v25  ;;  %v278_v29 = vrot.slane %v277_v27, 4 }
  0x5f   : > { %v273_v30 = vrot.slane %v272_v28, 2  ;;  %v279_v31 = vadd.f32 %v278_v29, %v277_v27 }
  0x61   : > { %v274_v32 = vadd.f32 %v273_v30, %v272_v28  ;;  %v280_v33 = vrot.slane %v279_v31, 2 }
  0x63   : > { %v275_v34 = vrot.slane %v274_v32, 1  ;;  %v281_v35 = vadd.f32 %v280_v33, %v279_v31 }
  0x65   : > { %v276_v36 = vadd.f32 %v275_v34, %v274_v32  ;;  %v282_v37 = vrot.slane %v281_v35, 1 }
  0x67   : > { %v283_v39 = vadd.f32 %v282_v37, %v281_v35  ;;  %579 = vrcp.f32 %v276_v36 }
  0x69   : > { %581 = vrcp.f32 %v283_v39 }
  0x71   : > { %v580_v45 = vpop.eup %579 }
  0x73   : > { %v582_v47 = vpop.eup %581 }
  0x74   : > { %v288_v49 = vcombine.low %v580_v45, %v582_v47 }
  0x76   : > { %v290_v51 = vmul.f32 %v578_v23, %v288_v49 }
  0x78   : > { %v311_v52 = vcombine.high %v290_v51, %v290_v51  ;;  %v313_v53 = vsel %vm844_vm1, %v290_v51, 0.0  ;;  %v309_v54 = vmul.f32 %v290_v51, %v290_v51 }
  0x7a   : > { %v314_v55 = vsel %vm308_vm2, %v311_v52, 0.0  ;;  %v317_v56 = vadd.f32 1.0, %v309_v54  ;;  %v322_v57 = vcombine.high %v309_v54, %v309_v54 }
  0x7b   : > { %v331_v58 = vcombine.low %v313_v53, %v314_v55  ;;  %v512_v59 = vcombine.low %v314_v55, %v314_v55 }
  0x7c   : > { %v319_v60 = vcombine.high %v317_v56, %v317_v56  ;;  %v324_v61 = vsel %vm844_vm1, %v317_v56, %v309_v54 }
  0x7d   : > { %v349_v62 = vsel %vm245_vm0, %v331_v58, 0.0  ;;  %v350_v63 = vsel %vm245_vm0, %v512_v59, 0.0 }
  0x7e   : > { %v351_v0 = vadd.f32 %v350_v63, %v349_v62  ;;  %v325_v1 = vsel %vm308_vm2, %v319_v60, %v322_v57 }
  0x7f   : > { %v338_v2 = vcombine.low %v324_v61, %v325_v1  ;;  %v513_v4 = vcombine.low %v325_v1, %v325_v1 }
  0x80   : > { %352 = vadd.xlane.f32.xlu0 %v351_v0 }
  0x81   : > { %v368_v5 = vsel %vm245_vm0, %v338_v2, 0.0  ;;  %v369_v6 = vsel %vm245_vm0, %v513_v4, 0.0 }
  0x82   : > { %v370_v7 = vadd.f32 %v369_v6, %v368_v5 }
  0x84   : > { %371 = vadd.xlane.f32.xlu0 %v370_v7 }
 0x10d   : > { %v353_v8 = vpop.xlane.xlu0 %352 }
 0x10e   : > { %v360_v9 = vrot.slane %v353_v8, %v833_v3 }
 0x110   : > { %363 = vst.msk [vmem:[%s216_s16] sm:$0x1] %vm362_vm3, %v360_v9 }
 0x111   : > { %v372_v10 = vpop.xlane.xlu0 %371 }
 0x112   : > { %v377_v11 = vrot.slane %v372_v10, %v833_v3 }
 0x114   : > { %379 = vst.msk [vmem:[%s216_s16 + $0x1] sm:$0x1] %vm362_vm3, %v377_v11 }
 0x115   : > { %626 = shalt.err (!%p623_p4)
}
 0x116   : > { %s627_s28 = scalar_lea.hbm %s863_s25, 32  ;;  %s631_s30 = scalar_lea.hbm %s914_s2, 64 }
 0x117   : > { %p628_p10 = scmp.ne.s32.totalorder %s863_s25, %s627_s28  ;;  %p632_p2 = scmp.lt.u32.totalorder %s863_s25, %s914_s2 }
 0x118   : > { %p633_p5 = scmp.lt.u32.totalorder %s631_s30, %s627_s28  ;;  %p635_p9 = scmp.lt.u32.totalorder %s627_s28, %s863_s25 }
 0x119   : > { %p629_p12 = pnand %p628_p10, %p925_p11 }
 0x11a   : > { %p634_p8 = por %p633_p5, %p632_p2 }
 0x11b   : > { %p630_p1 = pneg %p629_p12 }
 0x11c   : > { %p636_p0 = por %p635_p9, %p634_p8 }
 0x11e   : > { %p637_p7 = pnand %p636_p0, %p630_p1 }
 0x120   : > { %640 = shalt.err (!%p637_p7)
}
 0x121   : > { %516 = dma.vmem_to_hbm [thread:$0]  (%p925_p11), %s865_s18, 32, %s863_s25, %s381_s26  }
 0x122 PF: > { %s407_s6 = sand.u32 1, %s675_s9   ;;  %p926_p13 = scmp.ne.s32.totalorder %s919_s24, 0 }
 0x123   : > { %p927_p3 = scmp.ge.s32.totalorder %s695_s14, 2  ;;  %s408_s8 = scalar_lea.sflag [#allocation6], %s407_s6 }
 0x125   : > { %p523_p6 = pnand %p927_p3, %p926_p13 }
 0x127   : > { %670 = dma.done.wait (!%p523_p6), %s408_s8, 32  }
 0x128   : > { %672 = vsyncadd (!%p523_p6), %s408_s8, 4294967264  ;;  %s18_s14 = sadd.s32 1, %s695_s14   ;;  %s928_s9 = smov %s679_s10 }
 0x129   : > { %p15_p4 = scmp.ge.s32.totalorder %s18_s14, 4   ;;  %s929_s10 = smov %s683_s11 }
 0x12a   : > { %s930_s11 = smov %s770_s23  ;;  %s931_s12 = smov %s691_s13 }
 0x12b   : > { %s932_s13 = smov %s934_s17  ;;  %17 = sbr.rel (!%p15_p4) target bundleno = 6 (0x6), region = 84 }
 0x132   :  { %413 = vsyncpa [#allocation5], 1 }
 0x133   :  { %415 = vsyncpa [#allocation5 + $0x1], 1 }
 0x134   :  { %416 = vsyncpa [#allocation6], 1 }
 0x135   :  { %418 = vsyncpa [#allocation6 + $0x1], 1 }

</bundles_post_ra>
